<compile_context>
chip_gen: v7x
topology: tpu7x:2x2x1
jax: 0.10.0
libtpu: 0.0.40
codegen_flags: <defaults>
</compile_context>

<pallas_src>
import functools

import jax
import jax.numpy as jnp
from jax.experimental import pallas as pl
from jax.experimental.pallas import tpu as pltpu


def _round_up(x, m):
    return (x + m - 1) // m * m


def highway_kernel(x_ref, w_ref, b_ref, o_ref):
    """One row tile of the fused highway stack.

    x_ref : (TILE_N, Dp)        activation tile (f32 in, carried in f32)
    w_ref : (L, Dp, 2*Dp)       fused weights (bf16): cols [0:Dp]=transform,
                                [Dp:2*Dp]=gate, pre-transposed (y = x @ W)
    b_ref : (L, 1, 2*Dp)        fused biases (f32), same column layout
    o_ref : (TILE_N, Dp)        output tile
    """
    x = x_ref[...].astype(jnp.float32)
    d = x_ref.shape[-1]
    num_layers = w_ref.shape[0]
    for l in range(num_layers):  # small static trip-count -> fully unrolled
        # One fused bf16 MXU matmul per layer: (TILE_N, Dp) @ (Dp, 2*Dp), f32 acc.
        y = jnp.dot(x.astype(jnp.bfloat16), w_ref[l],
                    preferred_element_type=jnp.float32) + b_ref[l]
        h = jnp.maximum(y[:, :d], 0.0)   # ReLU transform (static lane-aligned slice)
        t = jax.nn.sigmoid(y[:, d:])     # gate; exp goes to the EUP
        x = x + t * (h - x)              # f32 highway carry (fewer VPU ops)
    # TODO(synk): training-mode dropout (pltpu.prng_seed/prng_random_bits masking)
    # is omitted; inference dropout == identity.
    o_ref[...] = x.astype(o_ref.dtype)


def highway_forward(x, w, b, *, tile_n=512):
    """Run the stacked highway layers over row-tiled activations.

    x: (N, Dp) activations, Dp a multiple of 128 (lane-dense).
    w: (L, Dp, 2*Dp) fused [transform | gate] weights in bf16 (pre-transposed).
    b: (L, 1, 2*Dp)  fused biases in f32.
    """
    n, d = x.shape
    num_layers = w.shape[0]

    # Row padding: no hard divisibility requirement on N.  Pick the largest
    # sublane-aligned tile <= requested tile_n that covers the data.
    n_pad = _round_up(n, 8)
    tile_n = min(tile_n, n_pad)
    n_pad = _round_up(n_pad, tile_n)
    if n_pad != n:
        x = jnp.pad(x, ((0, n_pad - n), (0, 0)))
    grid = (n_pad // tile_n,)

    out = pl.pallas_call(
        highway_kernel,
        out_shape=jax.ShapeDtypeStruct((n_pad, d), x.dtype),
        grid_spec=pl.GridSpec(
            grid=grid,
            in_specs=[
                pl.BlockSpec((tile_n, d), lambda i: (i, 0)),
                # Weights/biases use a constant index_map -> resident across the
                # row grid (no per-step refetch).
                # TODO(synk): single-buffer these constant blocks (pipeline depth 1)
                # to halve resident weight footprint on v7x's 64 MiB/TC VMEM.
                pl.BlockSpec((num_layers, d, 2 * d), lambda i: (0, 0, 0)),
                pl.BlockSpec((num_layers, 1, 2 * d), lambda i: (0, 0, 0)),
            ],
            out_specs=pl.BlockSpec((tile_n, d), lambda i: (i, 0)),
        ),
        compiler_params=pltpu.CompilerParams(
            dimension_semantics=("parallel",),          # shards rows across v7x TCs
            vmem_limit_bytes=48 * 1024 * 1024,          # fits v5e/v6e/v7x budgets
        ),
    )(x, w, b)
    return out[:n]


def pack_highway_params(wh, bh, wt, bt):
    """Fuse transform/gate params and zero-pad the feature dim to a multiple of 128.

    wh, wt: (L, D, D)  pre-transposed Linear weights (y = x @ W)
    bh, bt: (L, 1, D)  biases
    Returns (w_fused bf16 (L, Dp, 2*Dp), b_fused f32 (L, 1, 2*Dp), Dp).
    Zero padding is algebraically safe: padded activation lanes stay exactly 0
    through every highway layer (h_pad = relu(0) = 0; x_pad' = x_pad + t*(0 - x_pad)
    = (1 - t) * 0 = 0).
    """
    num_layers, d, _ = wh.shape
    d_pad = _round_up(d, 128)
    w = jnp.zeros((num_layers, d_pad, 2 * d_pad), jnp.float32)
    w = w.at[:, :d, :d].set(wh.astype(jnp.float32))
    w = w.at[:, :d, d_pad:d_pad + d].set(wt.astype(jnp.float32))
    b = jnp.zeros((num_layers, 1, 2 * d_pad), jnp.float32)
    b = b.at[:, :, :d].set(bh.astype(jnp.float32))
    b = b.at[:, :, d_pad:d_pad + d].set(bt.astype(jnp.float32))
    return w.astype(jnp.bfloat16), b, d_pad


def init_highway_params(key, dim, num_layers, dtype=jnp.float32):
    """Deterministic synthetic init of stacked highway params."""
    k_wh, k_bh, k_wt, k_bt = jax.random.split(key, 4)
    scale = 1.0 / jnp.sqrt(dim).astype(jnp.float32)
    wh = jax.random.uniform(k_wh, (num_layers, dim, dim), dtype, -scale, scale)
    bh = jax.random.uniform(k_bh, (num_layers, 1, dim), dtype, -scale, scale)
    wt = jax.random.uniform(k_wt, (num_layers, dim, dim), dtype, -scale, scale)
    # negative gate-bias init (standard highway trick)
    bt = jax.random.uniform(k_bt, (num_layers, 1, dim), dtype, -scale, scale) - 1.0
    return wh, bh, wt, bt


def ner_highway_forward(M, G, m_params, g_params, *, tile_n=512):
    """M: (B, T, 2d), G: (B, T, 8d) -> (M_trans, G_trans).

    Inference-mode dropout is identity.  M and G each get an independent
    highway stack, as in the PyTorch module.
    """
    b, t, dm = M.shape
    _, _, dg = G.shape

    m_w, m_b, dm_pad = pack_highway_params(*m_params)
    g_w, g_b, dg_pad = pack_highway_params(*g_params)

    m_flat = M.reshape(b * t, dm)
    g_flat = G.reshape(b * t, dg)
    if dm_pad != dm:
        m_flat = jnp.pad(m_flat, ((0, 0), (0, dm_pad - dm)))
    if dg_pad != dg:
        g_flat = jnp.pad(g_flat, ((0, 0), (0, dg_pad - dg)))

    m_out = highway_forward(m_flat, m_w, m_b, tile_n=tile_n)[:, :dm]
    g_out = highway_forward(g_flat, g_w, g_b, tile_n=tile_n)[:, :dg]
    return m_out.reshape(b, t, dm), g_out.reshape(b, t, dg)


def _highway_ref(x, wh, bh, wt, bt):
    """Pure-JAX reference matching the kernel's numerics (bf16 matmul, f32 carry)."""
    x = x.astype(jnp.float32)
    for l in range(wh.shape[0]):
        h = jnp.maximum(
            jnp.dot(x.astype(jnp.bfloat16), wh[l].astype(jnp.bfloat16),
                    preferred_element_type=jnp.float32) + bh[l], 0.0)
        t = jax.nn.sigmoid(
            jnp.dot(x.astype(jnp.bfloat16), wt[l].astype(jnp.bfloat16),
                    preferred_element_type=jnp.float32) + bt[l])
        x = t * h + (1.0 - t) * x
    return x


if __name__ == "__main__":
    key = jax.random.PRNGKey(0)
    k_m, k_g, k_pm, k_pg = jax.random.split(key, 4)

    batch, T = 2, 8
    d = 16
    M_dim = 2 * d          # 32  (padded to 128 lanes inside the wrapper)
    G_dim = 8 * d          # 128 (already lane-aligned)
    num_layers = 2

    M = jax.random.normal(k_m, (batch, T, M_dim), jnp.float32)
    G = jax.random.normal(k_g, (batch, T, G_dim), jnp.float32)

    m_params = init_highway_params(k_pm, M_dim, num_layers)
    g_params = init_highway_params(k_pg, G_dim, num_layers)

    fwd = jax.jit(functools.partial(ner_highway_forward, tile_n=512))
    M_trans, G_trans = fwd(M, G, m_params, g_params)
    jax.block_until_ready((M_trans, G_trans))

    # Correctness check against a pure-JAX reference with matching numerics.
    m_ref = _highway_ref(M.reshape(-1, M_dim), *m_params).reshape(batch, T, M_dim)
    g_ref = _highway_ref(G.reshape(-1, G_dim), *g_params).reshape(batch, T, G_dim)
    assert jnp.allclose(M_trans, m_ref, atol=1e-4, rtol=1e-4), (
        "M path mismatch, max abs err = %e" % float(jnp.max(jnp.abs(M_trans - m_ref))))
    assert jnp.allclose(G_trans, g_ref, atol=1e-4, rtol=1e-4), (
        "G path mismatch, max abs err = %e" % float(jnp.max(jnp.abs(G_trans - g_ref))))

    print("KERNEL_OK")
</pallas_src>

<mosaic_0001>
module attributes {stable_mosaic.version = 11 : i64} {
  func.func @highway_kernel(%arg0: i32, %arg1: memref<16x128xf32, #tpu.memory_space<vmem>>, %arg2: memref<2x128x256xbf16, #tpu.memory_space<vmem>>, %arg3: memref<2x1x256xf32, #tpu.memory_space<vmem>>, %arg4: memref<16x128xf32, #tpu.memory_space<vmem>>) attributes {dimension_semantics = [#tpu.dimension_semantics<parallel>], iteration_bounds = array<i64: 1>, scalar_prefetch = 0 : i64, scratch_operands = 0 : i64, tpu.core_type = #tpu.core_type<tc>, window_params = [{transform_indices = @transform_0, window_bounds = array<i64: 16, 128>}, {pipeline_mode = #tpu.pipeline_mode<synchronous>, transform_indices = @transform_1, window_bounds = array<i64: 2, 128, 256>}, {pipeline_mode = #tpu.pipeline_mode<synchronous>, transform_indices = @transform_2, window_bounds = array<i64: 2, 1, 256>}, {transform_indices = @transform_3, window_bounds = array<i64: 16, 128>}]} {
    %c0 = arith.constant 0 : index
    %c0_0 = arith.constant 0 : index
    %0 = vector.load %arg1[%c0, %c0_0] : memref<16x128xf32, #tpu.memory_space<vmem>>, vector<16x128xf32>
    %1 = arith.truncf %0 : vector<16x128xf32> to vector<16x128xbf16>
    %c0_1 = arith.constant 0 : index
    %c0_2 = arith.constant 0 : index
    %c0_3 = arith.constant 0 : index
    %2 = vector.load %arg2[%c0_1, %c0_2, %c0_3] : memref<2x128x256xbf16, #tpu.memory_space<vmem>>, vector<1x128x256xbf16>
    %3 = vector.shape_cast %2 : vector<1x128x256xbf16> to vector<128x256xbf16>
    %cst = arith.constant dense<0.000000e+00> : vector<16x256xf32>
    %4 = tpu.matmul %1, %3, %cst {dimension_numbers = #tpu.dot_dimension_numbers<[1], [0], [0], [1], [0, 0, 1, 1], [], []>} : vector<16x128xbf16>, vector<128x256xbf16>, vector<16x256xf32> -> vector<16x256xf32>
    %c0_4 = arith.constant 0 : index
    %c0_5 = arith.constant 0 : index
    %c0_6 = arith.constant 0 : index
    %5 = vector.load %arg3[%c0_4, %c0_5, %c0_6] : memref<2x1x256xf32, #tpu.memory_space<vmem>>, vector<1x1x256xf32>
    %6 = vector.shape_cast %5 : vector<1x1x256xf32> to vector<1x256xf32>
    %7 = vector.broadcast %6 : vector<1x256xf32> to vector<16x256xf32>
    %8 = arith.addf %4, %7 : vector<16x256xf32>
    %9 = vector.extract_strided_slice %8 {offsets = [0, 0], sizes = [16, 128], strides = [1, 1]} : vector<16x256xf32> to vector<16x128xf32>
    %cst_7 = arith.constant 0.000000e+00 : f32
    %10 = vector.broadcast %cst_7 : f32 to vector<16x128xf32>
    %11 = arith.maximumf %9, %10 : vector<16x128xf32>
    %12 = vector.extract_strided_slice %8 {offsets = [0, 128], sizes = [16, 128], strides = [1, 1]} : vector<16x256xf32> to vector<16x128xf32>
    %13 = arith.negf %12 : vector<16x128xf32>
    %14 = math.exp %13 : vector<16x128xf32>
    %cst_8 = arith.constant 1.000000e+00 : f32
    %15 = vector.broadcast %cst_8 : f32 to vector<16x128xf32>
    %16 = arith.addf %15, %14 : vector<16x128xf32>
    %17 = arith.divf %15, %16 : vector<16x128xf32>
    %18 = arith.subf %11, %0 : vector<16x128xf32>
    %19 = arith.mulf %17, %18 : vector<16x128xf32>
    %20 = arith.addf %0, %19 : vector<16x128xf32>
    %21 = arith.truncf %20 : vector<16x128xf32> to vector<16x128xbf16>
    %c1 = arith.constant 1 : index
    %c0_9 = arith.constant 0 : index
    %c0_10 = arith.constant 0 : index
    %22 = vector.load %arg2[%c1, %c0_9, %c0_10] : memref<2x128x256xbf16, #tpu.memory_space<vmem>>, vector<1x128x256xbf16>
    %23 = vector.shape_cast %22 : vector<1x128x256xbf16> to vector<128x256xbf16>
    %cst_11 = arith.constant dense<0.000000e+00> : vector<16x256xf32>
    %24 = tpu.matmul %21, %23, %cst_11 {dimension_numbers = #tpu.dot_dimension_numbers<[1], [0], [0], [1], [0, 0, 1, 1], [], []>} : vector<16x128xbf16>, vector<128x256xbf16>, vector<16x256xf32> -> vector<16x256xf32>
    %c1_12 = arith.constant 1 : index
    %c0_13 = arith.constant 0 : index
    %c0_14 = arith.constant 0 : index
    %25 = vector.load %arg3[%c1_12, %c0_13, %c0_14] : memref<2x1x256xf32, #tpu.memory_space<vmem>>, vector<1x1x256xf32>
    %26 = vector.shape_cast %25 : vector<1x1x256xf32> to vector<1x256xf32>
    %27 = vector.broadcast %26 : vector<1x256xf32> to vector<16x256xf32>
    %28 = arith.addf %24, %27 : vector<16x256xf32>
    %29 = vector.extract_strided_slice %28 {offsets = [0, 0], sizes = [16, 128], strides = [1, 1]} : vector<16x256xf32> to vector<16x128xf32>
    %cst_15 = arith.constant 0.000000e+00 : f32
    %30 = vector.broadcast %cst_15 : f32 to vector<16x128xf32>
    %31 = arith.maximumf %29, %30 : vector<16x128xf32>
    %32 = vector.extract_strided_slice %28 {offsets = [0, 128], sizes = [16, 128], strides = [1, 1]} : vector<16x256xf32> to vector<16x128xf32>
    %33 = arith.negf %32 : vector<16x128xf32>
    %34 = math.exp %33 : vector<16x128xf32>
    %cst_16 = arith.constant 1.000000e+00 : f32
    %35 = vector.broadcast %cst_16 : f32 to vector<16x128xf32>
    %36 = arith.addf %35, %34 : vector<16x128xf32>
    %37 = arith.divf %35, %36 : vector<16x128xf32>
    %38 = arith.subf %31, %20 : vector<16x128xf32>
    %39 = arith.mulf %37, %38 : vector<16x128xf32>
    %40 = arith.addf %20, %39 : vector<16x128xf32>
    %c0_17 = arith.constant 0 : index
    %c0_18 = arith.constant 0 : index
    %41 = vector.load %arg4[%c0_17, %c0_18] : memref<16x128xf32, #tpu.memory_space<vmem>>, vector<16x128xf32>
    tpu.vector_store %arg4[%c0_17, %c0_18], %40 {strides = array<i32>} : memref<16x128xf32, #tpu.memory_space<vmem>>, vector<16x128xf32>,
    return
  }
  func.func @transform_0(%arg0: i32) -> (i32, i32) {
    %c0_i32 = arith.constant 0 : i32
    %c0_i32_0 = arith.constant 0 : i32
    return %arg0, %c0_i32 : i32, i32
  }
  func.func @transform_1(%arg0: i32) -> (i32, i32, i32) {
    %c0_i32 = arith.constant 0 : i32
    %c0_i32_0 = arith.constant 0 : i32
    %c0_i32_1 = arith.constant 0 : i32
    %c0_i32_2 = arith.constant 0 : i32
    return %c0_i32, %c0_i32_0, %c0_i32_1 : i32, i32, i32
  }
  func.func @transform_2(%arg0: i32) -> (i32, i32, i32) {
    %c0_i32 = arith.constant 0 : i32
    %c0_i32_0 = arith.constant 0 : i32
    %c0_i32_1 = arith.constant 0 : i32
    %c0_i32_2 = arith.constant 0 : i32
    return %c0_i32, %c0_i32_0, %c0_i32_1 : i32, i32, i32
  }
  func.func @transform_3(%arg0: i32) -> (i32, i32) {
    %c0_i32 = arith.constant 0 : i32
    %c0_i32_0 = arith.constant 0 : i32
    return %arg0, %c0_i32 : i32, i32
  }
}

module attributes {stable_mosaic.version = 11 : i64} {
  func.func @highway_kernel(%arg0: i32, %arg1: memref<16x128xf32, #tpu.memory_space<vmem>>, %arg2: memref<2x128x256xbf16, #tpu.memory_space<vmem>>, %arg3: memref<2x1x256xf32, #tpu.memory_space<vmem>>, %arg4: memref<16x128xf32, #tpu.memory_space<vmem>>) attributes {dimension_semantics = [#tpu.dimension_semantics<parallel>], iteration_bounds = array<i64: 1>, scalar_prefetch = 0 : i64, scratch_operands = 0 : i64, tpu.core_type = #tpu.core_type<tc>, window_params = [{transform_indices = @transform_0, window_bounds = array<i64: 16, 128>}, {pipeline_mode = #tpu.pipeline_mode<synchronous>, transform_indices = @transform_1, window_bounds = array<i64: 2, 128, 256>}, {pipeline_mode = #tpu.pipeline_mode<synchronous>, transform_indices = @transform_2, window_bounds = array<i64: 2, 1, 256>}, {transform_indices = @transform_3, window_bounds = array<i64: 16, 128>}]} {
    %c0 = arith.constant 0 : index
    %c0_0 = arith.constant 0 : index
    %0 = vector.load %arg1[%c0, %c0_0] : memref<16x128xf32, #tpu.memory_space<vmem>>, vector<16x128xf32>
    %1 = arith.truncf %0 : vector<16x128xf32> to vector<16x128xbf16>
    %c0_1 = arith.constant 0 : index
    %c0_2 = arith.constant 0 : index
    %c0_3 = arith.constant 0 : index
    %2 = vector.load %arg2[%c0_1, %c0_2, %c0_3] : memref<2x128x256xbf16, #tpu.memory_space<vmem>>, vector<1x128x256xbf16>
    %3 = vector.shape_cast %2 : vector<1x128x256xbf16> to vector<128x256xbf16>
    %cst = arith.constant dense<0.000000e+00> : vector<16x256xf32>
    %4 = tpu.matmul %1, %3, %cst {dimension_numbers = #tpu.dot_dimension_numbers<[1], [0], [0], [1], [0, 0, 1, 1], [], []>} : vector<16x128xbf16>, vector<128x256xbf16>, vector<16x256xf32> -> vector<16x256xf32>
    %c0_4 = arith.constant 0 : index
    %c0_5 = arith.constant 0 : index
    %c0_6 = arith.constant 0 : index
    %5 = vector.load %arg3[%c0_4, %c0_5, %c0_6] : memref<2x1x256xf32, #tpu.memory_space<vmem>>, vector<1x1x256xf32>
    %6 = vector.shape_cast %5 : vector<1x1x256xf32> to vector<1x256xf32>
    %7 = vector.broadcast %6 : vector<1x256xf32> to vector<16x256xf32>
    %8 = arith.addf %4, %7 : vector<16x256xf32>
    %9 = vector.extract_strided_slice %8 {offsets = [0, 0], sizes = [16, 128], strides = [1, 1]} : vector<16x256xf32> to vector<16x128xf32>
    %cst_7 = arith.constant 0.000000e+00 : f32
    %10 = vector.broadcast %cst_7 : f32 to vector<16x128xf32>
    %11 = arith.maximumf %9, %10 : vector<16x128xf32>
    %12 = vector.extract_strided_slice %8 {offsets = [0, 128], sizes = [16, 128], strides = [1, 1]} : vector<16x256xf32> to vector<16x128xf32>
    %13 = arith.negf %12 : vector<16x128xf32>
    %14 = math.exp %13 : vector<16x128xf32>
    %cst_8 = arith.constant 1.000000e+00 : f32
    %15 = vector.broadcast %cst_8 : f32 to vector<16x128xf32>
    %16 = arith.addf %15, %14 : vector<16x128xf32>
    %17 = arith.divf %15, %16 : vector<16x128xf32>
    %18 = arith.subf %11, %0 : vector<16x128xf32>
    %19 = arith.mulf %17, %18 : vector<16x128xf32>
    %20 = arith.addf %0, %19 : vector<16x128xf32>
    %21 = arith.truncf %20 : vector<16x128xf32> to vector<16x128xbf16>
    %c1 = arith.constant 1 : index
    %c0_9 = arith.constant 0 : index
    %c0_10 = arith.constant 0 : index
    %22 = vector.load %arg2[%c1, %c0_9, %c0_10] : memref<2x128x256xbf16, #tpu.memory_space<vmem>>, vector<1x128x256xbf16>
    %23 = vector.shape_cast %22 : vector<1x128x256xbf16> to vector<128x256xbf16>
    %cst_11 = arith.constant dense<0.000000e+00> : vector<16x256xf32>
    %24 = tpu.matmul %21, %23, %cst_11 {dimension_numbers = #tpu.dot_dimension_numbers<[1], [0], [0], [1], [0, 0, 1, 1], [], []>} : vector<16x128xbf16>, vector<128x256xbf16>, vector<16x256xf32> -> vector<16x256xf32>
    %c1_12 = arith.constant 1 : index
    %c0_13 = arith.constant 0 : index
    %c0_14 = arith.constant 0 : index
    %25 = vector.load %arg3[%c1_12, %c0_13, %c0_14] : memref<2x1x256xf32, #tpu.memory_space<vmem>>, vector<1x1x256xf32>
    %26 = vector.shape_cast %25 : vector<1x1x256xf32> to vector<1x256xf32>
    %27 = vector.broadcast %26 : vector<1x256xf32> to vector<16x256xf32>
    %28 = arith.addf %24, %27 : vector<16x256xf32>
    %29 = vector.extract_strided_slice %28 {offsets = [0, 0], sizes = [16, 128], strides = [1, 1]} : vector<16x256xf32> to vector<16x128xf32>
    %cst_15 = arith.constant 0.000000e+00 : f32
    %30 = vector.broadcast %cst_15 : f32 to vector<16x128xf32>
    %31 = arith.maximumf %29, %30 : vector<16x128xf32>
    %32 = vector.extract_strided_slice %28 {offsets = [0, 128], sizes = [16, 128], strides = [1, 1]} : vector<16x256xf32> to vector<16x128xf32>
    %33 = arith.negf %32 : vector<16x128xf32>
    %34 = math.exp %33 : vector<16x128xf32>
    %cst_16 = arith.constant 1.000000e+00 : f32
    %35 = vector.broadcast %cst_16 : f32 to vector<16x128xf32>
    %36 = arith.addf %35, %34 : vector<16x128xf32>
    %37 = arith.divf %35, %36 : vector<16x128xf32>
    %38 = arith.subf %31, %20 : vector<16x128xf32>
    %39 = arith.mulf %37, %38 : vector<16x128xf32>
    %40 = arith.addf %20, %39 : vector<16x128xf32>
    %c0_17 = arith.constant 0 : index
    %c0_18 = arith.constant 0 : index
    %41 = vector.load %arg4[%c0_17, %c0_18] : memref<16x128xf32, #tpu.memory_space<vmem>>, vector<16x128xf32>
    tpu.vector_store %arg4[%c0_17, %c0_18], %40 {strides = array<i32>} : memref<16x128xf32, #tpu.memory_space<vmem>>, vector<16x128xf32>,
    return
  }
  func.func @transform_0(%arg0: i32) -> (i32, i32) {
    %c0_i32 = arith.constant 0 : i32
    %c0_i32_0 = arith.constant 0 : i32
    return %arg0, %c0_i32 : i32, i32
  }
  func.func @transform_1(%arg0: i32) -> (i32, i32, i32) {
    %c0_i32 = arith.constant 0 : i32
    %c0_i32_0 = arith.constant 0 : i32
    %c0_i32_1 = arith.constant 0 : i32
    %c0_i32_2 = arith.constant 0 : i32
    return %c0_i32, %c0_i32_0, %c0_i32_1 : i32, i32, i32
  }
  func.func @transform_2(%arg0: i32) -> (i32, i32, i32) {
    %c0_i32 = arith.constant 0 : i32
    %c0_i32_0 = arith.constant 0 : i32
    %c0_i32_1 = arith.constant 0 : i32
    %c0_i32_2 = arith.constant 0 : i32
    return %c0_i32, %c0_i32_0, %c0_i32_1 : i32, i32, i32
  }
  func.func @transform_3(%arg0: i32) -> (i32, i32) {
    %c0_i32 = arith.constant 0 : i32
    %c0_i32_0 = arith.constant 0 : i32
    return %arg0, %c0_i32 : i32, i32
  }
}

</mosaic_0001>

<bundles_post_ra>
// kernel: ner_highway_forward.2
= control target key start
LH: loop header
LB: loop body
LE: loop exit
PB: predicated region body
PF: predicated region fallthrough
CT: control target
= control target key end

     0   :  { %v487_v1 = vmov 0   ;;  %v36_v36 = vlaneseq  ;;  %s632_s1 = inlined_call_operand.vmem [shape: bf16[2,128,256], index: 1, kind: input, shape index: {}]   ;;  %s633_s0 = inlined_call_operand.vmem [shape: f32[16,128], index: 0, kind: input, shape index: {}]   ;;  %s634_s2 = inlined_call_operand.vmem [shape: f32[2,1,256], index: 2, kind: input, shape index: {}]   ;;  %s635_s3 = inlined_call_operand.vmem [shape: f32[16,128], index: 3, kind: output, shape index: {}]  }
   0x1   :  { %v423_v0 = vld [vmem:[%s632_s1 + $0x4] ss:$8 sps:$4 sm:$0xff]   ;;  %158 = vmatprep.mubr.bf16.mxu0 %v487_v1  ;;  %332 = vmatprep.mubr.bf16.mxu1 %v487_v1  ;;  %v425_v2 = vld [vmem:[%s632_s1] ss:$8 sps:$4 sm:$0xff]   ;;  %v426_v3 = vld [vmem:[%s632_s1 + $0x14] ss:$8 sps:$4 sm:$0xff]  }
   0x2   :  { %126 = vmatprep.subr.bf16.mxu0 %v423_v0  ;;  %v428_v4 = vld [vmem:[%s632_s1 + $0x10] ss:$8 sps:$4 sm:$0xff]   ;;  %v429_v5 = vld [vmem:[%s632_s1 + $0x24] ss:$8 sps:$4 sm:$0xff]   ;;  %v431_v6 = vld [vmem:[%s632_s1 + $0x20] ss:$8 sps:$4 sm:$0xff]  }
   0x3   :  { %127 = vmatpush1.bf16.msra.mxu0 %v425_v2  ;;  %v432_v7 = vld [vmem:[%s632_s1 + $0x34] ss:$8 sps:$4 sm:$0xff]   ;;  %v434_v8 = vld [vmem:[%s632_s1 + $0x30] ss:$8 sps:$4 sm:$0xff]   ;;  %v435_v9 = vld [vmem:[%s632_s1 + $0x44] ss:$8 sps:$4 sm:$0xff]  }
   0x4   :  { %128 = vmatprep.subr.bf16.mxu0 %v426_v3  ;;  %v437_v10 = vld [vmem:[%s632_s1 + $0x40] ss:$8 sps:$4 sm:$0xff]   ;;  %v438_v11 = vld [vmem:[%s632_s1 + $0x54] ss:$8 sps:$4 sm:$0xff]   ;;  %v440_v12 = vld [vmem:[%s632_s1 + $0x50] ss:$8 sps:$4 sm:$0xff]  }
   0x5   :  { %v441_v13 = vld [vmem:[%s632_s1 + $0x64] ss:$8 sps:$4 sm:$0xff]   ;;  %v443_v14 = vld [vmem:[%s632_s1 + $0x60] ss:$8 sps:$4 sm:$0xff]   ;;  %v444_v15 = vld [vmem:[%s632_s1 + $0x74] ss:$8 sps:$4 sm:$0xff]  }
   0x6   :  { %v446_v16 = vld [vmem:[%s632_s1 + $0x70] ss:$8 sps:$4 sm:$0xff]   ;;  %v559_v17 = vld [vmem:[%s633_s0] sm:$0xff]  ;;  %v564_v18 = vld [vmem:[%s633_s0 + $0x8] sm:$0xff]  ;;  %v37_v37 = vshrl.u32 %v36_v36, 7 }
   0x7   :  { %129 = vmatpush1.bf16.msra.mxu0 %v428_v4  ;;  %v17_v19 = vpack.c.bf16 %v564_v18, %v559_v17  ;;  %v447_v20 = vld [vmem:[%s632_s1 + $0x84] ss:$8 sps:$4 sm:$0xff]   ;;  %v449_v21 = vld [vmem:[%s632_s1 + $0x80] ss:$8 sps:$4 sm:$0xff]   ;;  %v450_v22 = vld [vmem:[%s632_s1 + $0x94] ss:$8 sps:$4 sm:$0xff]  }
   0x8   :  { %130 = vmatprep.subr.bf16.mxu0 %v429_v5  ;;  %300 = vmatprep.subr.bf16.mxu1 %v447_v20  ;;  %v452_v23 = vld [vmem:[%s632_s1 + $0x90] ss:$8 sps:$4 sm:$0xff]   ;;  %v453_v24 = vld [vmem:[%s632_s1 + $0xa4] ss:$8 sps:$4 sm:$0xff]   ;;  %v455_v25 = vld [vmem:[%s632_s1 + $0xa0] ss:$8 sps:$4 sm:$0xff]  }
   0x9   :  { %301 = vmatpush1.bf16.msra.mxu1 %v449_v21  ;;  %v456_v26 = vld [vmem:[%s632_s1 + $0xb4] ss:$8 sps:$4 sm:$0xff]   ;;  %v458_v27 = vld [vmem:[%s632_s1 + $0xb0] ss:$8 sps:$4 sm:$0xff]   ;;  %v459_v28 = vld [vmem:[%s632_s1 + $0xc4] ss:$8 sps:$4 sm:$0xff]  }
   0xa   :  { %302 = vmatprep.subr.bf16.mxu1 %v450_v22  ;;  %v461_v29 = vld [vmem:[%s632_s1 + $0xc0] ss:$8 sps:$4 sm:$0xff]   ;;  %v462_v30 = vld [vmem:[%s632_s1 + $0xd4] ss:$8 sps:$4 sm:$0xff]   ;;  %v464_v31 = vld [vmem:[%s632_s1 + $0xd0] ss:$8 sps:$4 sm:$0xff]  }
   0xb   :  { %131 = vmatpush1.bf16.msra.mxu0 %v431_v6  ;;  %v465_v32 = vld [vmem:[%s632_s1 + $0xe4] ss:$8 sps:$4 sm:$0xff]   ;;  %v467_v33 = vld [vmem:[%s632_s1 + $0xe0] ss:$8 sps:$4 sm:$0xff]   ;;  %v468_v34 = vld [vmem:[%s632_s1 + $0xf4] ss:$8 sps:$4 sm:$0xff]  }
   0xc   :  { %132 = vmatprep.subr.bf16.mxu0 %v432_v7  ;;  %v470_v35 = vld [vmem:[%s632_s1 + $0xf0] ss:$8 sps:$4 sm:$0xff]   ;;  %v42_v38 = vsub.s32 1, %v37_v37  ;;  %v34_v39 = vld [vmem:[%s634_s2] sm:$0x3]  ;;  %v38_v49 = vsub.s32 0, %v37_v37 }
   0xd   :  { %303 = vmatpush1.bf16.msra.mxu1 %v452_v23  ;;  %v403_v4 = vld [vmem:[%s634_s2 + $0x2] sm:$0x3] }
   0xe   :  { %304 = vmatprep.subr.bf16.mxu1 %v453_v24  ;;  %v43_v40 = vrot.slane %v34_v39, %v42_v38  ;;  %v39_v51 = vrot.slane %v34_v39, %v38_v49  ;;  %v217_v5 = vrot.slane %v403_v4, %v42_v38 }
   0xf   :  { %133 = vmatpush1.bf16.msra.mxu0 %v434_v8 }
  0x10   :  { %134 = vmatprep.subr.bf16.mxu0 %v435_v9 }
  0x11   :  { %305 = vmatpush1.bf16.msra.mxu1 %v455_v25 }
  0x12   :  { %306 = vmatprep.subr.bf16.mxu1 %v456_v26 }
  0x13   :  { %135 = vmatpush1.bf16.msra.mxu0 %v437_v10 }
  0x14   :  { %136 = vmatprep.subr.bf16.mxu0 %v438_v11 }
  0x15   :  { %307 = vmatpush1.bf16.msra.mxu1 %v458_v27 }
  0x16   :  { %308 = vmatprep.subr.bf16.mxu1 %v459_v28 }
  0x17   :  { %137 = vmatpush1.bf16.msra.mxu0 %v440_v12 }
  0x18   :  { %138 = vmatprep.subr.bf16.mxu0 %v441_v13 }
  0x19   :  { %309 = vmatpush1.bf16.msra.mxu1 %v461_v29 }
  0x1a   :  { %310 = vmatprep.subr.bf16.mxu1 %v462_v30 }
  0x1b   :  { %139 = vmatpush1.bf16.msra.mxu0 %v443_v14 }
  0x1c   :  { %140 = vmatprep.subr.bf16.mxu0 %v444_v15  ;;  %v213_v15 = vrot.slane %v403_v4, %v38_v49 }
  0x1d   :  { %311 = vmatpush1.bf16.msra.mxu1 %v464_v31 }
  0x1e   :  { %312 = vmatprep.subr.bf16.mxu1 %v465_v32 }
  0x1f   :  { %141 = vmatpush1.bf16.msra.mxu0 %v446_v16 }
  0x21   :  { %313 = vmatpush1.bf16.msra.mxu1 %v467_v33 }
  0x22   :  { %159 = vmatmul.mubr.bf16.vlgmr.msra.gmra.mrb[0].mxu0 %v17_v19  ;;  %314 = vmatprep.subr.bf16.mxu1 %v468_v34 }
  0x25   :  { %315 = vmatpush1.bf16.msra.mxu1 %v470_v35 }
  0xf5   :  { %v160_v41 = vpop.f32.mrb[0].mxu0 }
  0xf6   :  { %v162_v42 = vpop.f32.mrb[1].mxu0  ;;  %v161_v55 = vadd.f32 %v160_v41, %v39_v51 }
  0xf7   :  { %v163_v43 = vadd.f32 %v162_v42, %v43_v40  ;;  %v164_v44 = vpop.f32.mrb[2].mxu0 }
  0xf8   :  { %v166_v45 = vpop.f32.mrb[3].mxu0  ;;  %v165_v56 = vadd.f32 %v164_v44, %v39_v51  ;;  %v169_v57 = vmax.f32 %v161_v55, 0.0 }
  0xf9   :  { %v385_v46 = vmul.f32 -1.442695, %v163_v43  ;;  %v167_v47 = vadd.f32 %v166_v45, %v43_v40 }
  0xfa   :  { %v170_v58 = vmax.f32 %v165_v56, 0.0  ;;  %v183_v59 = vsub.f32 %v169_v57, %v559_v17 }
  0xfb   :  { %471 = vpow2.f32 %v385_v46  ;;  %v386_v48 = vmul.f32 -1.442695, %v167_v47 }
  0xfc   :  { %v184_v61 = vsub.f32 %v170_v58, %v564_v18 }
  0xfd   :  { %473 = vpow2.f32 %v386_v48 }
 0x105   :  { %v472_v50 = vpop.eup %471 }
 0x106   :  { %v177_v52 = vadd.f32 1.0, %v472_v50 }
 0x107   :  { %v474_v53 = vpop.eup %473 }
 0x108   :  { %475 = vrcp.f32 %v177_v52  ;;  %v178_v54 = vadd.f32 1.0, %v474_v53 }
 0x10a   :  { %477 = vrcp.f32 %v178_v54 }
 0x112   :  { %v476_v60 = vpop.eup %475 }
 0x113   :  { %v185_v62 = vmul.f32 %v476_v60, %v183_v59 }
 0x114   :  { %v478_v63 = vpop.eup %477 }
 0x115   :  { %v186_v0 = vmul.f32 %v478_v63, %v184_v61  ;;  %v187_v1 = vadd.f32 %v185_v62, %v559_v17 }
 0x117   :  { %v188_v2 = vadd.f32 %v186_v0, %v564_v18 }
 0x119   :  { %v189_v3 = vpack.c.bf16 %v188_v2, %v187_v1 }
 0x11b   :  { %333 = vmatmul.mubr.bf16.vlgmr.msra.gmra.mrb[0].mxu1 %v189_v3 }
 0x1ee   :  { %v334_v6 = vpop.f32.mrb[0].mxu1 }
 0x1ef   :  { %v336_v7 = vpop.f32.mrb[1].mxu1  ;;  %v335_v19 = vadd.f32 %v334_v6, %v213_v15 }
 0x1f0   :  { %v337_v8 = vadd.f32 %v336_v7, %v217_v5  ;;  %v338_v9 = vpop.f32.mrb[2].mxu1 }
 0x1f1   :  { %v340_v10 = vpop.f32.mrb[3].mxu1  ;;  %v339_v20 = vadd.f32 %v338_v9, %v213_v15  ;;  %v343_v21 = vmax.f32 %v335_v19, 0.0 }
 0x1f2   :  { %v420_v11 = vmul.f32 -1.442695, %v337_v8  ;;  %v341_v12 = vadd.f32 %v340_v10, %v217_v5 }
 0x1f3   :  { %v344_v22 = vmax.f32 %v339_v20, 0.0  ;;  %v357_v23 = vsub.f32 %v343_v21, %v187_v1 }
 0x1f4   :  { %479 = vpow2.f32 %v420_v11  ;;  %v421_v13 = vmul.f32 -1.442695, %v341_v12 }
 0x1f5   :  { %v358_v26 = vsub.f32 %v344_v22, %v188_v2 }
 0x1f6   :  { %481 = vpow2.f32 %v421_v13 }
 0x1fe   :  { %v480_v14 = vpop.eup %479 }
 0x1ff   :  { %v351_v16 = vadd.f32 1.0, %v480_v14 }
 0x200   :  { %v482_v17 = vpop.eup %481 }
 0x201   :  { %483 = vrcp.f32 %v351_v16  ;;  %v352_v18 = vadd.f32 1.0, %v482_v17 }
 0x203   :  { %485 = vrcp.f32 %v352_v18 }
 0x20b   :  { %v484_v24 = vpop.eup %483 }
 0x20c   :  { %v359_v25 = vmul.f32 %v484_v24, %v357_v23 }
 0x20d   :  { %v486_v27 = vpop.eup %485 }
 0x20e   :  { %v361_v28 = vadd.f32 %v359_v25, %v187_v1  ;;  %v360_v29 = vmul.f32 %v486_v27, %v358_v26 }
 0x210   :  { %363 = vst [vmem:[%s635_s3] sm:$0xff] %v361_v28  ;;  %v362_v30 = vadd.f32 %v360_v29, %v188_v2 }
 0x212   :  { %364 = vst [vmem:[%s635_s3 + $0x8] sm:$0xff] %v362_v30 }

// kernel: ner_highway_forward.3
= control target key start
LH: loop header
LB: loop body
LE: loop exit
PB: predicated region body
PF: predicated region fallthrough
CT: control target
= control target key end

     0   :  { %v527_v2 = vmov 0   ;;  %s681_s0 = inlined_call_operand.vmem [shape: f32[16,128], index: 0, kind: input, shape index: {}]   ;;  %s682_s1 = inlined_call_operand.vmem [shape: bf16[2,128,256], index: 1, kind: input, shape index: {}]   ;;  %s683_s2 = inlined_call_operand.vmem [shape: f32[2,1,256], index: 2, kind: input, shape index: {}]   ;;  %s684_s3 = inlined_call_operand.hbm [shape: f32[16,128], index: 3, kind: output, shape index: {}]  }
   0x1   :  { %v439_v0 = vld [vmem:[%s682_s1 + $0x4] ss:$8 sps:$4 sm:$0xff]   ;;  %v441_v1 = vld [vmem:[%s682_s1] ss:$8 sps:$4 sm:$0xff]   ;;  %159 = vmatprep.mubr.bf16.mxu0 %v527_v2  ;;  %333 = vmatprep.mubr.bf16.mxu1 %v527_v2  ;;  %v442_v3 = vld [vmem:[%s682_s1 + $0x14] ss:$8 sps:$4 sm:$0xff]  }
   0x2   :  { %127 = vmatprep.subr.bf16.mxu0 %v439_v0  ;;  %v444_v4 = vld [vmem:[%s682_s1 + $0x10] ss:$8 sps:$4 sm:$0xff]   ;;  %v445_v5 = vld [vmem:[%s682_s1 + $0x24] ss:$8 sps:$4 sm:$0xff]   ;;  %v447_v6 = vld [vmem:[%s682_s1 + $0x20] ss:$8 sps:$4 sm:$0xff]  }
   0x3   :  { %128 = vmatpush1.bf16.msra.mxu0 %v441_v1  ;;  %v448_v7 = vld [vmem:[%s682_s1 + $0x34] ss:$8 sps:$4 sm:$0xff]   ;;  %v450_v8 = vld [vmem:[%s682_s1 + $0x30] ss:$8 sps:$4 sm:$0xff]   ;;  %v451_v9 = vld [vmem:[%s682_s1 + $0x44] ss:$8 sps:$4 sm:$0xff]  }
   0x4   :  { %129 = vmatprep.subr.bf16.mxu0 %v442_v3  ;;  %v453_v10 = vld [vmem:[%s682_s1 + $0x40] ss:$8 sps:$4 sm:$0xff]   ;;  %v454_v11 = vld [vmem:[%s682_s1 + $0x54] ss:$8 sps:$4 sm:$0xff]  }
   0x7   :  { %130 = vmatpush1.bf16.msra.mxu0 %v444_v4 }
   0x8   :  { %131 = vmatprep.subr.bf16.mxu0 %v445_v5 }
   0xb   :  { %132 = vmatpush1.bf16.msra.mxu0 %v447_v6 }
   0xc   :  { %133 = vmatprep.subr.bf16.mxu0 %v448_v7 }
   0xf   :  { %134 = vmatpush1.bf16.msra.mxu0 %v450_v8 }
  0x10   :  { %135 = vmatprep.subr.bf16.mxu0 %v451_v9 }
  0x11   :  { %8 = vsyncpa [#allocation3], 0  ;;  %v456_v12 = vld [vmem:[%s682_s1 + $0x50] ss:$8 sps:$4 sm:$0xff]   ;;  %v457_v13 = vld [vmem:[%s682_s1 + $0x64] ss:$8 sps:$4 sm:$0xff]   ;;  %v37_v36 = vlaneseq }
  0x12   :  { %v459_v14 = vld [vmem:[%s682_s1 + $0x60] ss:$8 sps:$4 sm:$0xff]   ;;  %v460_v15 = vld [vmem:[%s682_s1 + $0x74] ss:$8 sps:$4 sm:$0xff]   ;;  %v462_v16 = vld [vmem:[%s682_s1 + $0x70] ss:$8 sps:$4 sm:$0xff]  }
  0x13   :  { %136 = vmatpush1.bf16.msra.mxu0 %v453_v10  ;;  %v602_v17 = vld [vmem:[%s681_s0] sm:$0xff]  ;;  %v607_v18 = vld [vmem:[%s681_s0 + $0x8] sm:$0xff]  ;;  %v466_v22 = vld [vmem:[%s682_s1 + $0x94] ss:$8 sps:$4 sm:$0xff]   ;;  %v38_v37 = vshrl.u32 %v37_v36, 7 }
  0x14   :  { %137 = vmatprep.subr.bf16.mxu0 %v454_v11  ;;  %v18_v19 = vpack.c.bf16 %v607_v18, %v602_v17  ;;  %v463_v20 = vld [vmem:[%s682_s1 + $0x84] ss:$8 sps:$4 sm:$0xff]   ;;  %v465_v21 = vld [vmem:[%s682_s1 + $0x80] ss:$8 sps:$4 sm:$0xff]   ;;  %v468_v23 = vld [vmem:[%s682_s1 + $0x90] ss:$8 sps:$4 sm:$0xff]  }
  0x15   :  { %301 = vmatprep.subr.bf16.mxu1 %v463_v20  ;;  %v469_v24 = vld [vmem:[%s682_s1 + $0xa4] ss:$8 sps:$4 sm:$0xff]   ;;  %v471_v25 = vld [vmem:[%s682_s1 + $0xa0] ss:$8 sps:$4 sm:$0xff]   ;;  %v472_v26 = vld [vmem:[%s682_s1 + $0xb4] ss:$8 sps:$4 sm:$0xff]  }
  0x16   :  { %302 = vmatpush1.bf16.msra.mxu1 %v465_v21  ;;  %v474_v27 = vld [vmem:[%s682_s1 + $0xb0] ss:$8 sps:$4 sm:$0xff]   ;;  %v475_v28 = vld [vmem:[%s682_s1 + $0xc4] ss:$8 sps:$4 sm:$0xff]   ;;  %v477_v29 = vld [vmem:[%s682_s1 + $0xc0] ss:$8 sps:$4 sm:$0xff]  }
  0x17   :  { %138 = vmatpush1.bf16.msra.mxu0 %v456_v12  ;;  %303 = vmatprep.subr.bf16.mxu1 %v466_v22  ;;  %v478_v30 = vld [vmem:[%s682_s1 + $0xd4] ss:$8 sps:$4 sm:$0xff]   ;;  %v480_v31 = vld [vmem:[%s682_s1 + $0xd0] ss:$8 sps:$4 sm:$0xff]   ;;  %v481_v32 = vld [vmem:[%s682_s1 + $0xe4] ss:$8 sps:$4 sm:$0xff]  }
  0x18   :  { %139 = vmatprep.subr.bf16.mxu0 %v457_v13  ;;  %v483_v33 = vld [vmem:[%s682_s1 + $0xe0] ss:$8 sps:$4 sm:$0xff]   ;;  %v484_v34 = vld [vmem:[%s682_s1 + $0xf4] ss:$8 sps:$4 sm:$0xff]   ;;  %v486_v35 = vld [vmem:[%s682_s1 + $0xf0] ss:$8 sps:$4 sm:$0xff]  }
  0x19   :  { %v43_v38 = vsub.s32 1, %v38_v37  ;;  %v35_v39 = vld [vmem:[%s683_s2] sm:$0x3]  ;;  %v39_v49 = vsub.s32 0, %v38_v37  ;;  %v416_v4 = vld [vmem:[%s683_s2 + $0x2] sm:$0x3] }
  0x1a   :  { %304 = vmatpush1.bf16.msra.mxu1 %v468_v23  ;;  %s528_s2 = smov [#allocation2]  }
  0x1b   :  { %140 = vmatpush1.bf16.msra.mxu0 %v459_v14  ;;  %305 = vmatprep.subr.bf16.mxu1 %v469_v24  ;;  %v44_v40 = vrot.slane %v35_v39, %v43_v38  ;;  %v40_v51 = vrot.slane %v35_v39, %v39_v49  ;;  %v218_v5 = vrot.slane %v416_v4, %v43_v38  ;;  %s371_s27 = sshll.u32 %s528_s2, 4  ;;  %s372_s27 = int_to_ptr.vmem [resolvable:$true] %s371_s27 }
  0x1c   :  { %141 = vmatprep.subr.bf16.mxu0 %v460_v15  ;;  %v214_v15 = vrot.slane %v416_v4, %v39_v49  ;;  %s503_s28 = scalar_lea.vmem %s372_s27, 256  ;;  %p508_p1 = scmp.lt.s32.totalorder %s372_s27, %s372_s27 }
  0x1d   :  { %p504_p0 = scmp.ne.s32.totalorder %s372_s27, %s503_s28  ;;  %p509_p2 = scmp.lt.s32.totalorder %s503_s28, %s503_s28 }
  0x1e   :  { %306 = vmatpush1.bf16.msra.mxu1 %v471_v25 }
  0x1f   :  { %142 = vmatpush1.bf16.msra.mxu0 %v462_v16  ;;  %307 = vmatprep.subr.bf16.mxu1 %v472_v26  ;;  %p510_p3 = por %p509_p2, %p508_p1 }
  0x21   :  { %p511_p4 = pnand %p510_p3, %p504_p0 }
  0x22   :  { %160 = vmatmul.mubr.bf16.vlgmr.msra.gmra.mrb[0].mxu0 %v18_v19  ;;  %308 = vmatpush1.bf16.msra.mxu1 %v474_v27 }
  0x23   :  { %309 = vmatprep.subr.bf16.mxu1 %v475_v28 }
  0x26   :  { %310 = vmatpush1.bf16.msra.mxu1 %v477_v29 }
  0x27   :  { %311 = vmatprep.subr.bf16.mxu1 %v478_v30 }
  0x2a   :  { %312 = vmatpush1.bf16.msra.mxu1 %v480_v31 }
  0x2b   :  { %313 = vmatprep.subr.bf16.mxu1 %v481_v32 }
  0x2e   :  { %314 = vmatpush1.bf16.msra.mxu1 %v483_v33 }
  0x2f   :  { %315 = vmatprep.subr.bf16.mxu1 %v484_v34 }
  0x32   :  { %316 = vmatpush1.bf16.msra.mxu1 %v486_v35 }
  0xf5   :  { %v161_v41 = vpop.f32.mrb[0].mxu0 }
  0xf6   :  { %v163_v42 = vpop.f32.mrb[1].mxu0  ;;  %v162_v55 = vadd.f32 %v161_v41, %v40_v51 }
  0xf7   :  { %v164_v43 = vadd.f32 %v163_v42, %v44_v40  ;;  %v165_v44 = vpop.f32.mrb[2].mxu0 }
  0xf8   :  { %v167_v45 = vpop.f32.mrb[3].mxu0  ;;  %v166_v56 = vadd.f32 %v165_v44, %v40_v51  ;;  %v170_v57 = vmax.f32 %v162_v55, 0.0 }
  0xf9   :  { %v398_v46 = vmul.f32 -1.442695, %v164_v43  ;;  %v168_v47 = vadd.f32 %v167_v45, %v44_v40 }
  0xfa   :  { %v171_v58 = vmax.f32 %v166_v56, 0.0  ;;  %v184_v59 = vsub.f32 %v170_v57, %v602_v17 }
  0xfb   :  { %487 = vpow2.f32 %v398_v46  ;;  %v399_v48 = vmul.f32 -1.442695, %v168_v47 }
  0xfc   :  { %v185_v61 = vsub.f32 %v171_v58, %v607_v18 }
  0xfd   :  { %489 = vpow2.f32 %v399_v48 }
 0x105   :  { %v488_v50 = vpop.eup %487 }
 0x106   :  { %v178_v52 = vadd.f32 1.0, %v488_v50 }
 0x107   :  { %v490_v53 = vpop.eup %489 }
 0x108   :  { %491 = vrcp.f32 %v178_v52  ;;  %v179_v54 = vadd.f32 1.0, %v490_v53 }
 0x10a   :  { %493 = vrcp.f32 %v179_v54 }
 0x112   :  { %v492_v60 = vpop.eup %491 }
 0x113   :  { %v186_v62 = vmul.f32 %v492_v60, %v184_v59 }
 0x114   :  { %v494_v63 = vpop.eup %493 }
 0x115   :  { %v187_v0 = vmul.f32 %v494_v63, %v185_v61  ;;  %v188_v1 = vadd.f32 %v186_v62, %v602_v17 }
 0x117   :  { %v189_v2 = vadd.f32 %v187_v0, %v607_v18 }
 0x119   :  { %v190_v3 = vpack.c.bf16 %v189_v2, %v188_v1 }
 0x11b   :  { %334 = vmatmul.mubr.bf16.vlgmr.msra.gmra.mrb[0].mxu1 %v190_v3 }
 0x1ee   :  { %v335_v6 = vpop.f32.mrb[0].mxu1 }
 0x1ef   :  { %v337_v7 = vpop.f32.mrb[1].mxu1  ;;  %v336_v19 = vadd.f32 %v335_v6, %v214_v15 }
 0x1f0   :  { %v338_v8 = vadd.f32 %v337_v7, %v218_v5  ;;  %v339_v9 = vpop.f32.mrb[2].mxu1 }
 0x1f1   :  { %v341_v10 = vpop.f32.mrb[3].mxu1  ;;  %v340_v20 = vadd.f32 %v339_v9, %v214_v15  ;;  %v344_v21 = vmax.f32 %v336_v19, 0.0 }
 0x1f2   :  { %v433_v11 = vmul.f32 -1.442695, %v338_v8  ;;  %v342_v12 = vadd.f32 %v341_v10, %v218_v5 }
 0x1f3   :  { %v345_v22 = vmax.f32 %v340_v20, 0.0  ;;  %v358_v23 = vsub.f32 %v344_v21, %v188_v1 }
 0x1f4   :  { %495 = vpow2.f32 %v433_v11  ;;  %v434_v13 = vmul.f32 -1.442695, %v342_v12 }
 0x1f5   :  { %v359_v25 = vsub.f32 %v345_v22, %v189_v2 }
 0x1f6   :  { %497 = vpow2.f32 %v434_v13 }
 0x1fe   :  { %v496_v14 = vpop.eup %495 }
 0x1ff   :  { %v352_v16 = vadd.f32 1.0, %v496_v14 }
 0x200   :  { %v498_v17 = vpop.eup %497 }
 0x201   :  { %499 = vrcp.f32 %v352_v16  ;;  %v353_v18 = vadd.f32 1.0, %v498_v17 }
 0x203   :  { %501 = vrcp.f32 %v353_v18 }
 0x20b   :  { %v500_v24 = vpop.eup %499 }
 0x20c   :  { %v360_v26 = vmul.f32 %v500_v24, %v358_v23 }
 0x20d   :  { %v502_v27 = vpop.eup %501 }
 0x20e   :  { %v361_v28 = vmul.f32 %v502_v27, %v359_v25  ;;  %v362_v29 = vadd.f32 %v360_v26, %v188_v1 }
 0x210   :  { %v363_v30 = vadd.f32 %v361_v28, %v189_v2  ;;  %364 = vst [vmem:[#allocation2] sm:$0xff] %v362_v29 }
 0x212   :  { %365 = vst [vmem:[#allocation2 + $0x8] sm:$0xff] %v363_v30 }
 0x213   :  { %514 = shalt.err (!%p511_p4)
}
 0x214   :  { %s515_s4 = scalar_lea.hbm %s684_s3, 256 }
 0x215   :  { %p516_p5 = scmp.ne.s32.totalorder %s684_s3, %s515_s4  ;;  %p519_p6 = scmp.lt.u32.totalorder %s515_s4, %s684_s3 }
 0x217   :  { %p521_p7 = pnand %p519_p6, %p516_p5 }
 0x219   :  { %524 = shalt.err (!%p521_p7)
}
 0x21a   :  { %s529_s9 = smov 128   ;;  %s530_s10 = smov 8  }
 0x21b   :  { %377 = dma.vmem_to_hbm [thread:$0]  %s372_s27, 256, %s684_s3, [#allocation3], %s529_s9, %s529_s9, %s530_s10  }
 0x21c   :  { %525 = dma.done.wait [#allocation3], 256  }
 0x21d   :  { %526 = vsyncadd [#allocation3], 4294967040 }
 0x21e   :  { %381 = vsyncpa [#allocation3], 1 }

</bundles_post_ra>
